<compile_context>
chip_gen: v5e
topology: v5e:2x2
jax: 0.10.0
libtpu: 0.0.40
codegen_flags: <defaults>
</compile_context>

<pallas_src>
import functools
import math

import jax
import jax.numpy as jnp
from jax.experimental import pallas as pl
from jax.experimental.pallas import tpu as pltpu

_LOG_2PI = math.log(2.0 * math.pi)


def _position_feature_prior_kernel(zxf_ref, zhf_ref, n_ref, out_ref, *, n_dim, n_feat):
    """Per batch tile.

    zxf_ref: (bt, N*n_dim)  positions, flattened lane-dense
    zhf_ref: (bt, N*n_feat) node features, flattened lane-dense
    n_ref:   (bt, 1)        float32 number of unmasked nodes per row
    out_ref: (bt, 1)        float32 log_pz
    """
    zx = zxf_ref[...].astype(jnp.float32)
    zh = zhf_ref[...].astype(jnp.float32)

    # Inputs are pre-masked (module precondition), so the quadratic terms
    # need no per-node mask; plain dense row reductions on the VPU/XLU.
    r2 = (jnp.sum(zx * zx, axis=-1, keepdims=True)
          + jnp.sum(zh * zh, axis=-1, keepdims=True))          # (bt, 1)

    n_nodes = n_ref[...]                                        # (bt, 1)

    # log_pz_x + log_pz_h with all constants folded into one -0.5 * (...):
    #   -0.5*r2 - 0.5*(N_b - 1)*D*log(2pi) - 0.5*N_b*F*log(2pi)
    out_ref[...] = -0.5 * (r2 + (n_nodes * (n_dim + n_feat) - n_dim) * _LOG_2PI)


def _round_up(x, m):
    return (x + m - 1) // m * m


def _vmem_capacity_bytes():
    try:
        return int(pltpu.get_tpu_info().vmem_capacity_bytes)
    except Exception:
        return 64 * 1024 * 1024  # conservative fallback (v7x per-TC VMEM)


def _num_tensorcores():
    try:
        d = jax.devices()[0]
        kind = str(getattr(d, "device_kind", "")).lower()
        return 2 if "v7" in kind else 1
    except Exception:
        return 1


def _pick_vmem_limit():
    # ~3/4 of physical VMEM, capped at 96 MiB (v5e/v6e: 96 MiB, v7x: 48 MiB).
    return int(min(_vmem_capacity_bytes() * 3 // 4, 96 * 1024 * 1024))


def _pick_batch_tile(batch, nd_flat, nf_flat, data_itemsize, vmem_limit_bytes, num_tc):
    """Largest batch tile whose VMEM footprint fits comfortably.

    Budget = 2x double-buffered inputs + ~1x in-kernel temporaries
    (zx*zx, zh*zh, partials), against half of the scoped VMEM limit.
    """
    per_row = (
        _round_up(nd_flat, 128) * data_itemsize   # flattened z_x row
        + _round_up(nf_flat, 128) * data_itemsize # flattened z_h row
        + 128 * 4                                 # n_nodes row (lane-padded)
        + 128 * 4                                 # output row (lane-padded)
    )
    budget = vmem_limit_bytes // 2                # 50% headroom
    bt = budget // (3 * per_row)                  # 2x buffers + 1x temporaries
    bt = int(max(8, min(bt, 4096)))
    bt = (bt // 8) * 8

    # Megacore (v7x only): make sure big batches split into >=2 (even) steps
    # so both TensorCores get equal work under dimension_semantics=parallel.
    if num_tc >= 2 and batch > 16:
        steps = max(2, -(-batch // bt))
        if steps % 2:
            steps += 1
        bt = _round_up(-(-batch // steps), 8)

    bt = min(bt, _round_up(batch, 8))
    return max(8, bt)


def position_feature_prior_forward(z_x, z_h, node_mask, *, bt=None):
    """Pallas implementation of PositionFeaturePrior.forward.

    Args:
      z_x:       [B, N, n_dim] positions (masked, zero center-of-gravity).
      z_h:       [B, N, in_node_nf] node features (masked).
      node_mask: [B, N, 1] {0,1} mask.
      bt: optional batch-tile override (multiple of 8).
    Returns:
      [B] float32 log-prior per batch row.
    """
    assert z_x.ndim == 3 and z_h.ndim == 3 and node_mask.ndim == 3
    B, N, D = z_x.shape
    F = z_h.shape[-1]
    assert z_h.shape[:2] == (B, N) and node_mask.shape == (B, N, 1)
    # TODO(synk): forward()'s host-side value asserts (inputs properly masked,
    # positions mean-zero under the mask) are preconditions of the module and
    # are not re-checked inside the kernel; the kernel relies on them to drop
    # the per-node mask from the quadratic terms.

    data_dtype = z_x.dtype if jnp.issubdtype(z_x.dtype, jnp.floating) else jnp.float32
    z_x = z_x.astype(data_dtype)
    z_h = z_h.astype(data_dtype)

    # Lane-dense 2-D layout for the streamed data.
    zxf = z_x.reshape(B, N * D)
    zhf = z_h.reshape(B, N * F)
    # Mask reduced to one scalar per row in the wrapper (tiny): no mask stream
    # or per-tile XLU reduction inside the kernel.
    n_nodes = jnp.sum(node_mask.astype(jnp.float32), axis=1)   # (B, 1)

    vmem_limit = _pick_vmem_limit()
    num_tc = _num_tensorcores()
    if bt is None:
        bt = _pick_batch_tile(B, N * D, N * F, jnp.dtype(data_dtype).itemsize,
                              vmem_limit, num_tc)
    assert bt % 8 == 0, "batch tile must be a multiple of 8"

    # Zero-pad the batch instead of requiring B % bt == 0; padded rows have
    # n_nodes == 0 and are sliced off below (their output is nonzero but unused).
    B_pad = pl.cdiv(B, bt) * bt
    if B_pad != B:
        pad = B_pad - B
        zxf = jnp.pad(zxf, ((0, pad), (0, 0)))
        zhf = jnp.pad(zhf, ((0, pad), (0, 0)))
        n_nodes = jnp.pad(n_nodes, ((0, pad), (0, 0)))

    kernel = functools.partial(_position_feature_prior_kernel, n_dim=D, n_feat=F)

    out = pl.pallas_call(
        kernel,
        out_shape=jax.ShapeDtypeStruct((B_pad, 1), jnp.float32),
        grid_spec=pltpu.PrefetchScalarGridSpec(
            num_scalar_prefetch=0,
            grid=(B_pad // bt,),
            in_specs=[
                pl.BlockSpec((bt, N * D), lambda i: (i, 0)),
                pl.BlockSpec((bt, N * F), lambda i: (i, 0)),
                pl.BlockSpec((bt, 1), lambda i: (i, 0)),
            ],
            out_specs=pl.BlockSpec((bt, 1), lambda i: (i, 0)),
        ),
        compiler_params=pltpu.CompilerParams(
            dimension_semantics=("parallel",),
            vmem_limit_bytes=vmem_limit,
        ),
    )(zxf, zhf, n_nodes)
    return out[:B, 0]


def _reference_forward(z_x, z_h, node_mask):
    """Pure-JAX mirror of the PyTorch forward (for validation)."""
    D = z_x.shape[-1]
    r2_x = jnp.sum(z_x.astype(jnp.float32) ** 2, axis=(1, 2))
    n = jnp.sum(node_mask[..., 0].astype(jnp.float32), axis=1)
    log_pz_x = -0.5 * r2_x - 0.5 * (n - 1.0) * D * _LOG_2PI
    log_pz_h = jnp.sum((-0.5 * z_h.astype(jnp.float32) ** 2 - 0.5 * _LOG_2PI)
                       * node_mask.astype(jnp.float32), axis=(1, 2))
    return log_pz_x + log_pz_h


if __name__ == "__main__":
    key = jax.random.PRNGKey(0)
    B, N, n_dim, in_node_nf = 2, 8, 3, 4
    kx, kh = jax.random.split(key)

    # Variable node counts per molecule -> nontrivial mask.
    lengths = jnp.array([8, 5], dtype=jnp.int32)
    node_mask = (jnp.arange(N)[None, :] < lengths[:, None]).astype(jnp.float32)[..., None]

    z_x = jax.random.normal(kx, (B, N, n_dim), dtype=jnp.float32) * node_mask
    # Module precondition: positions have zero center of gravity over unmasked nodes.
    com = jnp.sum(z_x, axis=1, keepdims=True) / jnp.sum(node_mask, axis=1, keepdims=True)
    z_x = (z_x - com) * node_mask
    z_h = jax.random.normal(kh, (B, N, in_node_nf), dtype=jnp.float32) * node_mask

    out = jax.block_until_ready(position_feature_prior_forward(z_x, z_h, node_mask))
    ref = _reference_forward(z_x, z_h, node_mask)

    assert out.shape == (B,)
    assert out.dtype == jnp.float32
    assert jnp.allclose(out, ref, rtol=1e-5, atol=1e-5), (out, ref)
    print("KERNEL_OK")
</pallas_src>

<mosaic_0001>
module attributes {stable_mosaic.version = 11 : i64} {
  func.func @_position_feature_prior_kernel(%arg0: i32, %arg1: memref<8x24xf32, #tpu.memory_space<vmem>>, %arg2: memref<8x32xf32, #tpu.memory_space<vmem>>, %arg3: memref<8x1xf32, #tpu.memory_space<vmem>>, %arg4: memref<8x1xf32, #tpu.memory_space<vmem>>) attributes {dimension_semantics = [#tpu.dimension_semantics<parallel>], iteration_bounds = array<i64: 1>, scalar_prefetch = 0 : i64, scratch_operands = 0 : i64, tpu.core_type = #tpu.core_type<tc>, window_params = [{transform_indices = @transform_0, window_bounds = array<i64: 8, 24>}, {transform_indices = @transform_1, window_bounds = array<i64: 8, 32>}, {transform_indices = @transform_2, window_bounds = array<i64: 8, 1>}, {transform_indices = @transform_3, window_bounds = array<i64: 8, 1>}]} {
    %c0 = arith.constant 0 : index
    %c0_0 = arith.constant 0 : index
    %0 = vector.load %arg1[%c0, %c0_0] : memref<8x24xf32, #tpu.memory_space<vmem>>, vector<8x24xf32>
    %c0_1 = arith.constant 0 : index
    %c0_2 = arith.constant 0 : index
    %1 = vector.load %arg2[%c0_1, %c0_2] : memref<8x32xf32, #tpu.memory_space<vmem>>, vector<8x32xf32>
    %2 = arith.mulf %0, %0 : vector<8x24xf32>
    %cst = arith.constant dense<0.000000e+00> : vector<8xf32>
    %3 = vector.multi_reduction <add>, %2, %cst [1] : vector<8x24xf32> to vector<8xf32>
    %4 = vector.shape_cast %3 : vector<8xf32> to vector<8x1xf32>
    %5 = arith.mulf %1, %1 : vector<8x32xf32>
    %cst_3 = arith.constant dense<0.000000e+00> : vector<8xf32>
    %6 = vector.multi_reduction <add>, %5, %cst_3 [1] : vector<8x32xf32> to vector<8xf32>
    %7 = vector.shape_cast %6 : vector<8xf32> to vector<8x1xf32>
    %8 = arith.addf %4, %7 : vector<8x1xf32>
    %c0_4 = arith.constant 0 : index
    %c0_5 = arith.constant 0 : index
    %9 = vector.load %arg3[%c0_4, %c0_5] : memref<8x1xf32, #tpu.memory_space<vmem>>, vector<8x1xf32>
    %cst_6 = arith.constant 7.000000e+00 : f32
    %10 = vector.broadcast %cst_6 : f32 to vector<8x1xf32>
    %11 = arith.mulf %9, %10 : vector<8x1xf32>
    %cst_7 = arith.constant 3.000000e+00 : f32
    %12 = vector.broadcast %cst_7 : f32 to vector<8x1xf32>
    %13 = arith.subf %11, %12 : vector<8x1xf32>
    %cst_8 = arith.constant 1.83787704 : f32
    %14 = vector.broadcast %cst_8 : f32 to vector<8x1xf32>
    %15 = arith.mulf %13, %14 : vector<8x1xf32>
    %16 = arith.addf %8, %15 : vector<8x1xf32>
    %cst_9 = arith.constant -5.000000e-01 : f32
    %17 = vector.broadcast %cst_9 : f32 to vector<8x1xf32>
    %18 = arith.mulf %17, %16 : vector<8x1xf32>
    %c0_10 = arith.constant 0 : index
    %c0_11 = arith.constant 0 : index
    %19 = vector.load %arg4[%c0_10, %c0_11] : memref<8x1xf32, #tpu.memory_space<vmem>>, vector<8x1xf32>
    tpu.vector_store %arg4[%c0_10, %c0_11], %18 {strides = array<i32>} : memref<8x1xf32, #tpu.memory_space<vmem>>, vector<8x1xf32>,
    return
  }
  func.func @transform_0(%arg0: i32) -> (i32, i32) {
    %c0_i32 = arith.constant 0 : i32
    %c0_i32_0 = arith.constant 0 : i32
    return %arg0, %c0_i32 : i32, i32
  }
  func.func @transform_1(%arg0: i32) -> (i32, i32) {
    %c0_i32 = arith.constant 0 : i32
    %c0_i32_0 = arith.constant 0 : i32
    return %arg0, %c0_i32 : i32, i32
  }
  func.func @transform_2(%arg0: i32) -> (i32, i32) {
    %c0_i32 = arith.constant 0 : i32
    %c0_i32_0 = arith.constant 0 : i32
    return %arg0, %c0_i32 : i32, i32
  }
  func.func @transform_3(%arg0: i32) -> (i32, i32) {
    %c0_i32 = arith.constant 0 : i32
    %c0_i32_0 = arith.constant 0 : i32
    return %arg0, %c0_i32 : i32, i32
  }
}

</mosaic_0001>

<bundles_post_ra>
// kernel: tpu_custom_call.1
= control target key start
LH: loop header
LB: loop body
LE: loop exit
PB: predicated region body
PF: predicated region fallthrough
CT: control target
= control target key end

     0   :  { %8 = vsyncpa [#allocation3], 0  ;;  %s82_s15 = smov [#allocation2]   ;;  %s115_s0 = inlined_call_operand.vmem [shape: f32[8,24], index: 0, kind: input, shape index: {}]   ;;  %s116_s1 = inlined_call_operand.hbm [shape: f32[8,32], index: 1, kind: input, shape index: {}]   ;;  %s117_s2 = inlined_call_operand.vmem [shape: f32[8,1], index: 2, kind: input, shape index: {}]   ;;  %s118_s3 = inlined_call_operand.vmem [shape: f32[8,1], index: 3, kind: output, shape index: {}]  }
   0x1   :  { %s16_s14 = sshll.u32 %s116_s1, 4  ;;  %s18_s16 = sshll.u32 %s82_s15, 4  ;;  %s17_s14 = int_to_ptr.hbm [resolvable:$true] %s16_s14  ;;  %s19_s16 = int_to_ptr.vmem [resolvable:$true] %s18_s16 }
   0x2   :  { %21 = dma.hbm_to_vmem [thread:$0]  %s17_s14, 128, %s19_s16, [#allocation3]  }
   0x3   :  { %80 = dma.done.wait [#allocation3], 128  }
   0x4   :  { %81 = vsyncadd [#allocation3], 4294967168  ;;  %v28_v0 = vld [vmem:[%s115_s0] sm:$0xff]  ;;  %vm31_vm0 = vcmask 195584   ;;  %vm36_vm1 = vcmask 261120   ;;  %vm47_vm2 = vcmask 7168  }
   0x5   :  { %v30_v1 = vmul.f32 %v28_v0, %v28_v0  ;;  %v29_v2 = vld [vmem:[#allocation2] sm:$0xff] }
   0x6   :  { %v35_v4 = vmul.f32 %v29_v2, %v29_v2  ;;  %v41_v6 = vld [vmem:[%s117_s2] sm:$0xff] }
   0x7   :  { %v32_v3 = vsel %vm31_vm0, %v30_v1, 0.0  ;;  %v42_v7 = vmul.f32 7.0, %v41_v6 }
   0x8   :  { %33 = vadd.xlane.f32.xlu0 %v32_v3  ;;  %v37_v5 = vsel %vm36_vm1, %v35_v4, 0.0 }
   0x9   :  { %v54_v9 = vadd.f32 -3.0, %v42_v7 }
   0xb   :  { %v44_v10 = vmul.f32 1.837877, %v54_v9 }
  0x10   :  { %38 = vadd.xlane.f32.xlu0 %v37_v5 }
  0x7b   :  { %v34_v8 = vpop.xlane.xlu0 %33 }
  0x83   :  { %v39_v11 = vpop.xlane.xlu0 %38 }
  0x84   :  { %v40_v12 = vadd.f32 %v39_v11, %v34_v8 }
  0x86   :  { %v45_v13 = vadd.f32 %v44_v10, %v40_v12 }
  0x88   :  { %v46_v14 = vmul.f32 -0.5, %v45_v13 }
  0x8a   :  { %48 = vst.msk [vmem:[%s118_s3] sm:$0xff] %vm47_vm2, %v46_v14 }
  0x8b   :  { %53 = vsyncpa [#allocation3], 1 }

</bundles_post_ra>
